<compile_context>
chip_gen: v5e
topology: v5e:2x2
jax: 0.10.0
libtpu: 0.0.40
codegen_flags: <defaults>
</compile_context>

<pallas_src>
import functools

import jax
import jax.numpy as jnp
import numpy as np
from jax.experimental import pallas as pl
from jax.experimental.pallas import tpu as pltpu

C_OUT = 128
EPS = 1e-5

# block1: Conv1d(k=8,  s=4)  -> BN -> ReLU -> MaxPool1d(8, 8)
# block3: Conv1d(k=64, s=12) -> BN -> ReLU -> MaxPool1d(2, 2)
K1, S1, P1 = 8, 4, 8
K3, S3, P3 = 64, 12, 2


def _round_up(v, m):
    return ((v + m - 1) // m) * m


# ----------------------------- Pallas kernel --------------------------------

def _fused_kernel(p1_ref, p3_ref, w1_ref, b1_ref, w3_ref, b3_ref,
                  o1_ref, o3_ref, *, pool1, pool3, rows1, rows3):
    # pX_ref: (poolX * rowsX, KX) pool-major im2col rows (rowsX % 8 == 0)
    # wX_ref: (KX, 128) BN-folded conv weight; bX_ref: (1, 128) folded bias
    # oX_ref: (rowsX, 128)  -- channels on lanes

    def branch(p_ref, w_ref, b_ref, o_ref, pool, rows):
        # One MXU matmul, fused bias + ReLU.
        y = jnp.dot(p_ref[...], w_ref[...], preferred_element_type=jnp.float32)
        y = jnp.maximum(y + b_ref[...], 0.0)
        # MaxPool over the pool-major blocks: sublane-aligned static slices.
        acc = y[0:rows, :]
        for j in range(1, pool):
            acc = jnp.maximum(acc, y[j * rows:(j + 1) * rows, :])
        o_ref[...] = acc

    branch(p1_ref, w1_ref, b1_ref, o1_ref, pool1, rows1)
    branch(p3_ref, w3_ref, b3_ref, o3_ref, pool3, rows3)


# ------------------------------- wrapper -------------------------------------

def _patches_pool_major(x, k, stride, pool, rows_pad):
    """x: (N, 1, L) -> (pool * rows_pad, k) pool-major im2col rows (no gather).

    Flat row index = j * rows_pad + (n * lp + i), where conv output position
    t = i * pool + j (MaxPool floor truncation already applied, tail padded
    with zeros up to rows_pad).
    """
    n, _, length = x.shape
    l_out = (length - k) // stride + 1
    lp = l_out // pool                      # PyTorch MaxPool1d floor
    rows = lp * pool
    # taps[t][n, r] = x[n, 0, r*stride + t]  (static strided slices only)
    cols = [x[:, 0, t:t + (rows - 1) * stride + 1:stride] for t in range(k)]
    p = jnp.stack(cols, axis=-1)            # (N, rows, k)
    p = p.reshape(n, lp, pool, k)
    p = jnp.transpose(p, (2, 0, 1, 3))      # (pool, N, lp, k)
    p = p.reshape(pool, n * lp, k)
    pad = rows_pad - n * lp
    if pad:
        p = jnp.pad(p, ((0, 0), (0, pad), (0, 0)))
    return p.reshape(pool * rows_pad, k)


def fold_bn(w, b, gamma, beta, mean, var):
    """Fold eval-mode BatchNorm into the conv: (K,128) weight, (1,128) bias."""
    scale = gamma / jnp.sqrt(var + EPS)
    k = w.shape[-1]
    w_eff = (w.reshape(C_OUT, k) * scale[:, None]).T.astype(jnp.float32)
    b_eff = ((b - mean) * scale + beta).reshape(1, C_OUT).astype(jnp.float32)
    return w_eff, b_eff


def fold_params(params):
    """Do the BN fold once; reuse the folded weights across forward calls."""
    return {name: fold_bn(*p) for name, p in params.items()}


def view_msnn_forward(x, folded):
    """x: (N, 1, L) f32 -> (out1 (N,128,Lp1), out2 (N,128,Lp3)) in PyTorch NCL."""
    n, _, length = x.shape
    w1, b1 = folded["block1"]
    w3, b3 = folded["block3"]

    lp1 = ((length - K1) // S1 + 1) // P1
    lp3 = ((length - K3) // S3 + 1) // P3
    rows1 = _round_up(n * lp1, 8)
    rows3 = _round_up(n * lp3, 8)

    p1 = _patches_pool_major(x, K1, S1, P1, rows1)   # (P1*rows1, K1)
    p3 = _patches_pool_major(x, K3, S3, P3, rows3)   # (P3*rows3, K3)

    kernel = functools.partial(_fused_kernel, pool1=P1, pool3=P3,
                               rows1=rows1, rows3=rows3)

    out1p, out3p = pl.pallas_call(
        kernel,
        out_shape=(
            jax.ShapeDtypeStruct((rows1, C_OUT), jnp.float32),
            jax.ShapeDtypeStruct((rows3, C_OUT), jnp.float32),
        ),
        grid=(1,),  # whole problem is VMEM-resident at these shapes
        in_specs=[
            pl.BlockSpec((P1 * rows1, K1), lambda i: (0, 0)),
            pl.BlockSpec((P3 * rows3, K3), lambda i: (0, 0)),
            pl.BlockSpec((K1, C_OUT), lambda i: (0, 0)),
            pl.BlockSpec((1, C_OUT), lambda i: (0, 0)),
            pl.BlockSpec((K3, C_OUT), lambda i: (0, 0)),
            pl.BlockSpec((1, C_OUT), lambda i: (0, 0)),
        ],
        out_specs=(
            pl.BlockSpec((rows1, C_OUT), lambda i: (0, 0)),
            pl.BlockSpec((rows3, C_OUT), lambda i: (0, 0)),
        ),
        compiler_params=pltpu.CompilerParams(
            dimension_semantics=("arbitrary",)),
    )(p1, p3, w1, b1, w3, b3)

    # PyTorch returns NCL; drop the padded rows and restore (N, C, L_pool).
    out1 = jnp.transpose(out1p[: n * lp1].reshape(n, lp1, C_OUT), (0, 2, 1))
    out3 = jnp.transpose(out3p[: n * lp3].reshape(n, lp3, C_OUT), (0, 2, 1))
    return out1, out3


# ---------------- reference (pure JAX, mirrors PyTorch eval-mode) ------------

def _ref_branch(x, w, b, gamma, beta, mean, var, *, k, stride, pool):
    y = jax.lax.conv_general_dilated(
        x, w, window_strides=(stride,), padding="VALID",
        dimension_numbers=("NCH", "OIH", "NCH"),
        precision=jax.lax.Precision.HIGHEST)
    y = y + b[None, :, None]
    scale = gamma / jnp.sqrt(var + EPS)
    y = scale[None, :, None] * (y - mean[None, :, None]) + beta[None, :, None]
    y = jnp.maximum(y, 0.0)
    n, c, length = y.shape
    lp = length // pool
    y = y[:, :, : lp * pool].reshape(n, c, lp, pool).max(axis=-1)
    return y


def _make_branch_params(key, k):
    ks = jax.random.split(key, 6)
    w = jax.random.normal(ks[0], (C_OUT, 1, k), jnp.float32) * 0.1
    b = jax.random.normal(ks[1], (C_OUT,), jnp.float32) * 0.1
    gamma = jax.random.uniform(ks[2], (C_OUT,), jnp.float32, 0.5, 1.5)
    beta = jax.random.normal(ks[3], (C_OUT,), jnp.float32) * 0.1
    mean = jax.random.normal(ks[4], (C_OUT,), jnp.float32) * 0.1
    var = jax.random.uniform(ks[5], (C_OUT,), jnp.float32, 0.5, 1.5)
    return (w, b, gamma, beta, mean, var)


if __name__ == "__main__":
    key = jax.random.PRNGKey(0)
    k_x, k_b1, k_b3 = jax.random.split(key, 3)

    # Small shapes consistent with the module: batch=2, 1 input channel,
    # signal length 512 (module default input_dim is 3000).
    N, L = 2, 512
    x = jax.random.normal(k_x, (N, 1, L), jnp.float32)

    params = {
        "block1": _make_branch_params(k_b1, K1),
        "block3": _make_branch_params(k_b3, K3),
    }
    folded = fold_params(params)            # BN fold done once, reused

    fwd = jax.jit(view_msnn_forward)
    out1, out2 = fwd(x, folded)
    jax.block_until_ready((out1, out2))

    # Shape check against PyTorch semantics:
    #   block1: L_conv = (512-8)//4+1 = 127, pool8 -> 15   => (2, 128, 15)
    #   block3: L_conv = (512-64)//12+1 = 38, pool2 -> 19  => (2, 128, 19)
    assert out1.shape == (N, C_OUT, 15), out1.shape
    assert out2.shape == (N, C_OUT, 19), out2.shape

    ref1 = _ref_branch(x, *params["block1"], k=K1, stride=S1, pool=P1)
    ref2 = _ref_branch(x, *params["block3"], k=K3, stride=S3, pool=P3)
    # f32 MXU matmul in the kernel -> differences are ~1e-6; keep some margin.
    np.testing.assert_allclose(np.asarray(out1), np.asarray(ref1),
                               rtol=1e-3, atol=1e-3)
    np.testing.assert_allclose(np.asarray(out2), np.asarray(ref2),
                               rtol=1e-3, atol=1e-3)

    print("KERNEL_OK")
</pallas_src>

<mosaic_0001>
module attributes {stable_mosaic.version = 11 : i64} {
  func.func @_fused_kernel(%arg0: i32, %arg1: memref<256x8xf32, #tpu.memory_space<vmem>>, %arg2: memref<80x64xf32, #tpu.memory_space<vmem>>, %arg3: memref<8x128xf32, #tpu.memory_space<vmem>>, %arg4: memref<1x128xf32, #tpu.memory_space<vmem>>, %arg5: memref<64x128xf32, #tpu.memory_space<vmem>>, %arg6: memref<1x128xf32, #tpu.memory_space<vmem>>, %arg7: memref<32x128xf32, #tpu.memory_space<vmem>>, %arg8: memref<40x128xf32, #tpu.memory_space<vmem>>) attributes {dimension_semantics = [#tpu.dimension_semantics<arbitrary>], iteration_bounds = array<i64: 1>, scalar_prefetch = 0 : i64, scratch_operands = 0 : i64, tpu.core_type = #tpu.core_type<tc>, window_params = [{pipeline_mode = #tpu.pipeline_mode<synchronous>, transform_indices = @transform_0, window_bounds = array<i64: 256, 8>}, {pipeline_mode = #tpu.pipeline_mode<synchronous>, transform_indices = @transform_1, window_bounds = array<i64: 80, 64>}, {pipeline_mode = #tpu.pipeline_mode<synchronous>, transform_indices = @transform_2, window_bounds = array<i64: 8, 128>}, {pipeline_mode = #tpu.pipeline_mode<synchronous>, transform_indices = @transform_3, window_bounds = array<i64: 1, 128>}, {pipeline_mode = #tpu.pipeline_mode<synchronous>, transform_indices = @transform_4, window_bounds = array<i64: 64, 128>}, {pipeline_mode = #tpu.pipeline_mode<synchronous>, transform_indices = @transform_5, window_bounds = array<i64: 1, 128>}, {pipeline_mode = #tpu.pipeline_mode<synchronous>, transform_indices = @transform_6, window_bounds = array<i64: 32, 128>}, {pipeline_mode = #tpu.pipeline_mode<synchronous>, transform_indices = @transform_7, window_bounds = array<i64: 40, 128>}]} {
    %c0 = arith.constant 0 : index
    %c0_0 = arith.constant 0 : index
    %0 = vector.load %arg1[%c0, %c0_0] : memref<256x8xf32, #tpu.memory_space<vmem>>, vector<256x8xf32>
    %c0_1 = arith.constant 0 : index
    %c0_2 = arith.constant 0 : index
    %1 = vector.load %arg3[%c0_1, %c0_2] : memref<8x128xf32, #tpu.memory_space<vmem>>, vector<8x128xf32>
    %cst = arith.constant dense<0.000000e+00> : vector<256x128xf32>
    %2 = tpu.matmul %0, %1, %cst {dimension_numbers = #tpu.dot_dimension_numbers<[1], [0], [0], [1], [0, 0, 1, 1], [], []>} : vector<256x8xf32>, vector<8x128xf32>, vector<256x128xf32> -> vector<256x128xf32>
    %c0_3 = arith.constant 0 : index
    %c0_4 = arith.constant 0 : index
    %3 = vector.load %arg4[%c0_3, %c0_4] : memref<1x128xf32, #tpu.memory_space<vmem>>, vector<1x128xf32>
    %4 = vector.broadcast %3 : vector<1x128xf32> to vector<256x128xf32>
    %5 = arith.addf %2, %4 : vector<256x128xf32>
    %cst_5 = arith.constant 0.000000e+00 : f32
    %6 = vector.broadcast %cst_5 : f32 to vector<256x128xf32>
    %7 = arith.maximumf %5, %6 : vector<256x128xf32>
    %8 = vector.extract_strided_slice %7 {offsets = [0, 0], sizes = [32, 128], strides = [1, 1]} : vector<256x128xf32> to vector<32x128xf32>
    %9 = vector.extract_strided_slice %7 {offsets = [32, 0], sizes = [32, 128], strides = [1, 1]} : vector<256x128xf32> to vector<32x128xf32>
    %10 = arith.maximumf %8, %9 : vector<32x128xf32>
    %11 = vector.extract_strided_slice %7 {offsets = [64, 0], sizes = [32, 128], strides = [1, 1]} : vector<256x128xf32> to vector<32x128xf32>
    %12 = arith.maximumf %10, %11 : vector<32x128xf32>
    %13 = vector.extract_strided_slice %7 {offsets = [96, 0], sizes = [32, 128], strides = [1, 1]} : vector<256x128xf32> to vector<32x128xf32>
    %14 = arith.maximumf %12, %13 : vector<32x128xf32>
    %15 = vector.extract_strided_slice %7 {offsets = [128, 0], sizes = [32, 128], strides = [1, 1]} : vector<256x128xf32> to vector<32x128xf32>
    %16 = arith.maximumf %14, %15 : vector<32x128xf32>
    %17 = vector.extract_strided_slice %7 {offsets = [160, 0], sizes = [32, 128], strides = [1, 1]} : vector<256x128xf32> to vector<32x128xf32>
    %18 = arith.maximumf %16, %17 : vector<32x128xf32>
    %19 = vector.extract_strided_slice %7 {offsets = [192, 0], sizes = [32, 128], strides = [1, 1]} : vector<256x128xf32> to vector<32x128xf32>
    %20 = arith.maximumf %18, %19 : vector<32x128xf32>
    %21 = vector.extract_strided_slice %7 {offsets = [224, 0], sizes = [32, 128], strides = [1, 1]} : vector<256x128xf32> to vector<32x128xf32>
    %22 = arith.maximumf %20, %21 : vector<32x128xf32>
    %c0_6 = arith.constant 0 : index
    %c0_7 = arith.constant 0 : index
    %23 = vector.load %arg7[%c0_6, %c0_7] : memref<32x128xf32, #tpu.memory_space<vmem>>, vector<32x128xf32>
    tpu.vector_store %arg7[%c0_6, %c0_7], %22 {strides = array<i32>} : memref<32x128xf32, #tpu.memory_space<vmem>>, vector<32x128xf32>,
    %c0_8 = arith.constant 0 : index
    %c0_9 = arith.constant 0 : index
    %24 = vector.load %arg2[%c0_8, %c0_9] : memref<80x64xf32, #tpu.memory_space<vmem>>, vector<80x64xf32>
    %c0_10 = arith.constant 0 : index
    %c0_11 = arith.constant 0 : index
    %25 = vector.load %arg5[%c0_10, %c0_11] : memref<64x128xf32, #tpu.memory_space<vmem>>, vector<64x128xf32>
    %cst_12 = arith.constant dense<0.000000e+00> : vector<80x128xf32>
    %26 = tpu.matmul %24, %25, %cst_12 {dimension_numbers = #tpu.dot_dimension_numbers<[1], [0], [0], [1], [0, 0, 1, 1], [], []>} : vector<80x64xf32>, vector<64x128xf32>, vector<80x128xf32> -> vector<80x128xf32>
    %c0_13 = arith.constant 0 : index
    %c0_14 = arith.constant 0 : index
    %27 = vector.load %arg6[%c0_13, %c0_14] : memref<1x128xf32, #tpu.memory_space<vmem>>, vector<1x128xf32>
    %28 = vector.broadcast %27 : vector<1x128xf32> to vector<80x128xf32>
    %29 = arith.addf %26, %28 : vector<80x128xf32>
    %cst_15 = arith.constant 0.000000e+00 : f32
    %30 = vector.broadcast %cst_15 : f32 to vector<80x128xf32>
    %31 = arith.maximumf %29, %30 : vector<80x128xf32>
    %32 = vector.extract_strided_slice %31 {offsets = [0, 0], sizes = [40, 128], strides = [1, 1]} : vector<80x128xf32> to vector<40x128xf32>
    %33 = vector.extract_strided_slice %31 {offsets = [40, 0], sizes = [40, 128], strides = [1, 1]} : vector<80x128xf32> to vector<40x128xf32>
    %34 = arith.maximumf %32, %33 : vector<40x128xf32>
    %c0_16 = arith.constant 0 : index
    %c0_17 = arith.constant 0 : index
    %35 = vector.load %arg8[%c0_16, %c0_17] : memref<40x128xf32, #tpu.memory_space<vmem>>, vector<40x128xf32>
    tpu.vector_store %arg8[%c0_16, %c0_17], %34 {strides = array<i32>} : memref<40x128xf32, #tpu.memory_space<vmem>>, vector<40x128xf32>,
    return
  }
  func.func @transform_0(%arg0: i32) -> (i32, i32) {
    %c0_i32 = arith.constant 0 : i32
    %c0_i32_0 = arith.constant 0 : i32
    %c0_i32_1 = arith.constant 0 : i32
    return %c0_i32, %c0_i32_0 : i32, i32
  }
  func.func @transform_1(%arg0: i32) -> (i32, i32) {
    %c0_i32 = arith.constant 0 : i32
    %c0_i32_0 = arith.constant 0 : i32
    %c0_i32_1 = arith.constant 0 : i32
    return %c0_i32, %c0_i32_0 : i32, i32
  }
  func.func @transform_2(%arg0: i32) -> (i32, i32) {
    %c0_i32 = arith.constant 0 : i32
    %c0_i32_0 = arith.constant 0 : i32
    %c0_i32_1 = arith.constant 0 : i32
    return %c0_i32, %c0_i32_0 : i32, i32
  }
  func.func @transform_3(%arg0: i32) -> (i32, i32) {
    %c0_i32 = arith.constant 0 : i32
    %c0_i32_0 = arith.constant 0 : i32
    %c0_i32_1 = arith.constant 0 : i32
    return %c0_i32, %c0_i32_0 : i32, i32
  }
  func.func @transform_4(%arg0: i32) -> (i32, i32) {
    %c0_i32 = arith.constant 0 : i32
    %c0_i32_0 = arith.constant 0 : i32
    %c0_i32_1 = arith.constant 0 : i32
    return %c0_i32, %c0_i32_0 : i32, i32
  }
  func.func @transform_5(%arg0: i32) -> (i32, i32) {
    %c0_i32 = arith.constant 0 : i32
    %c0_i32_0 = arith.constant 0 : i32
    %c0_i32_1 = arith.constant 0 : i32
    return %c0_i32, %c0_i32_0 : i32, i32
  }
  func.func @transform_6(%arg0: i32) -> (i32, i32) {
    %c0_i32 = arith.constant 0 : i32
    %c0_i32_0 = arith.constant 0 : i32
    %c0_i32_1 = arith.constant 0 : i32
    return %c0_i32, %c0_i32_0 : i32, i32
  }
  func.func @transform_7(%arg0: i32) -> (i32, i32) {
    %c0_i32 = arith.constant 0 : i32
    %c0_i32_0 = arith.constant 0 : i32
    %c0_i32_1 = arith.constant 0 : i32
    return %c0_i32, %c0_i32_0 : i32, i32
  }
}

</mosaic_0001>

<bundles_post_ra>
// kernel: view_msnn_forward.1
= control target key start
LH: loop header
LB: loop body
LE: loop exit
PB: predicated region body
PF: predicated region fallthrough
CT: control target
= control target key end

     0   :  { %vm62_vm0 = vcmask 64512   ;;  %vm358_vm1 = vcmask 523264   ;;  %s872_s2 = inlined_call_operand.vmem [shape: f32[8,128], index: 2, kind: input, shape index: {}]   ;;  %s873_s4 = inlined_call_operand.vmem [shape: f32[64,128], index: 4, kind: input, shape index: {}]   ;;  %s874_s0 = inlined_call_operand.vmem [shape: f32[256,8], index: 0, kind: input, shape index: {}]   ;;  %s875_s3 = inlined_call_operand.vmem [shape: f32[1,128], index: 3, kind: input, shape index: {}]   ;;  %s876_s1 = inlined_call_operand.vmem [shape: f32[80,64], index: 1, kind: input, shape index: {}]   ;;  %s877_s5 = inlined_call_operand.vmem [shape: f32[1,128], index: 5, kind: input, shape index: {}]   ;;  %s878_s7 = inlined_call_operand.vmem [shape: f32[40,128], index: 7, kind: output, shape index: {1}]   ;;  %s879_s6 = inlined_call_operand.vmem [shape: f32[32,128], index: 6, kind: output, shape index: {0}]  }
   0x1   :  { %v57_v0 = vld [vmem:[%s872_s2] sm:$0xff]  ;;  %v353_v1 = vld [vmem:[%s873_s4 + $0x38] sm:$0xff]  ;;  %v47_v4 = vld [vmem:[%s874_s0 + $0xb0] sm:$0xff] }
   0x2   :  { %v25_v2 = vld [vmem:[%s874_s0] sm:$0xff]  ;;  %174 = vmatpush.msra.mxu0 %v57_v0  ;;  %506 = vmatpush.msra.mxu2 %v57_v0  ;;  %v36_v3 = vld [vmem:[%s874_s0 + $0x58] sm:$0xff]  ;;  %v352_v5 = vld [vmem:[%s873_s4 + $0x30] sm:$0xff] }
   0x3   :  { %507 = vmatpush.msra.mxu3 %v57_v0  ;;  %397 = vmatpush.msra.mxu1 %v353_v1  ;;  %v351_v6 = vld [vmem:[%s873_s4 + $0x28] sm:$0xff]  ;;  %v350_v7 = vld [vmem:[%s873_s4 + $0x20] sm:$0xff]  ;;  %v349_v8 = vld [vmem:[%s873_s4 + $0x18] sm:$0xff] }
   0x4   :  { %464 = vmatmul.msk.f32.vlgmr.msra.gmra.mxu0 %vm62_vm0, %v25_v2  ;;  %475 = vmatmul.msk.f32.vlgmr.msra.gmra.mxu2 %vm62_vm0, %v36_v3  ;;  %v26_v9 = vld [vmem:[%s874_s0 + $0x8] sm:$0xff]  ;;  %v37_v10 = vld [vmem:[%s874_s0 + $0x60] sm:$0xff]  ;;  %v48_v11 = vld [vmem:[%s874_s0 + $0xb8] sm:$0xff] }
   0x5   :  { %486 = vmatmul.msk.f32.vlgmr.msra.gmra.mxu3 %vm62_vm0, %v47_v4  ;;  %398 = vmatpush.msra.mxu1 %v352_v5  ;;  %v348_v12 = vld [vmem:[%s873_s4 + $0x10] sm:$0xff]  ;;  %v347_v13 = vld [vmem:[%s873_s4 + $0x8] sm:$0xff]  ;;  %v346_v14 = vld [vmem:[%s873_s4] sm:$0xff] }
   0x6   :  { %v336_v15 = vld [vmem:[%s876_s1] sm:$0xff]  ;;  %v27_v16 = vld [vmem:[%s874_s0 + $0x10] sm:$0xff]  ;;  %v38_v17 = vld [vmem:[%s874_s0 + $0x68] sm:$0xff] }
   0x7   :  { %399 = vmatpush.msra.mxu1 %v351_v6  ;;  %v49_v18 = vld [vmem:[%s874_s0 + $0xc0] sm:$0xff]  ;;  %v337_v19 = vld [vmem:[%s876_s1 + $0x8] sm:$0xff]  ;;  %v28_v20 = vld [vmem:[%s874_s0 + $0x18] sm:$0xff] }
   0x8   :  { %v39_v21 = vld [vmem:[%s874_s0 + $0x70] sm:$0xff]  ;;  %v50_v22 = vld [vmem:[%s874_s0 + $0xc8] sm:$0xff]  ;;  %v29_v24 = vld [vmem:[%s874_s0 + $0x20] sm:$0xff] }
   0x9   :  { %400 = vmatpush.msra.mxu1 %v350_v7  ;;  %v338_v23 = vld [vmem:[%s876_s1 + $0x10] sm:$0xff]  ;;  %v40_v25 = vld [vmem:[%s874_s0 + $0x78] sm:$0xff]  ;;  %v30_v28 = vld [vmem:[%s874_s0 + $0x28] sm:$0xff] }
   0xa   :  { %v51_v26 = vld [vmem:[%s874_s0 + $0xd0] sm:$0xff]  ;;  %v339_v27 = vld [vmem:[%s876_s1 + $0x18] sm:$0xff]  ;;  %v41_v29 = vld [vmem:[%s874_s0 + $0x80] sm:$0xff] }
   0xb   :  { %401 = vmatpush.msra.mxu1 %v349_v8  ;;  %v52_v30 = vld [vmem:[%s874_s0 + $0xd8] sm:$0xff]  ;;  %v340_v31 = vld [vmem:[%s876_s1 + $0x20] sm:$0xff]  ;;  %v31_v32 = vld [vmem:[%s874_s0 + $0x30] sm:$0xff] }
   0xc   :  { %465 = vmatmul.msk.f32.gmra.mxu0 %vm62_vm0, %v26_v9  ;;  %476 = vmatmul.msk.f32.gmra.mxu2 %vm62_vm0, %v37_v10  ;;  %v42_v33 = vld [vmem:[%s874_s0 + $0x88] sm:$0xff]  ;;  %v53_v34 = vld [vmem:[%s874_s0 + $0xe0] sm:$0xff]  ;;  %v32_v36 = vld [vmem:[%s874_s0 + $0x38] sm:$0xff] }
   0xd   :  { %487 = vmatmul.msk.f32.gmra.mxu3 %vm62_vm0, %v48_v11  ;;  %402 = vmatpush.msra.mxu1 %v348_v12  ;;  %v341_v35 = vld [vmem:[%s876_s1 + $0x28] sm:$0xff]  ;;  %v43_v37 = vld [vmem:[%s874_s0 + $0x90] sm:$0xff]  ;;  %v33_v40 = vld [vmem:[%s874_s0 + $0x40] sm:$0xff] }
   0xe   :  { %v54_v38 = vld [vmem:[%s874_s0 + $0xe8] sm:$0xff]  ;;  %v342_v39 = vld [vmem:[%s876_s1 + $0x30] sm:$0xff]  ;;  %v44_v41 = vld [vmem:[%s874_s0 + $0x98] sm:$0xff] }
   0xf   :  { %403 = vmatpush.msra.mxu1 %v347_v13  ;;  %v55_v42 = vld [vmem:[%s874_s0 + $0xf0] sm:$0xff]  ;;  %v343_v43 = vld [vmem:[%s876_s1 + $0x38] sm:$0xff]  ;;  %v34_v44 = vld [vmem:[%s874_s0 + $0x48] sm:$0xff] }
  0x10   :  { %v45_v45 = vld [vmem:[%s874_s0 + $0xa0] sm:$0xff]  ;;  %v56_v46 = vld [vmem:[%s874_s0 + $0xf8] sm:$0xff]  ;;  %v35_v48 = vld [vmem:[%s874_s0 + $0x50] sm:$0xff] }
  0x11   :  { %404 = vmatpush.msra.mxu1 %v346_v14  ;;  %v344_v47 = vld [vmem:[%s876_s1 + $0x40] sm:$0xff]  ;;  %v46_v49 = vld [vmem:[%s874_s0 + $0xa8] sm:$0xff] }
  0x12   :  { %496 = vmatmul.msk.f32.vlgmr.msra.gmra.mxu1 %vm358_vm1, %v336_v15  ;;  %v345_v50 = vld [vmem:[%s876_s1 + $0x48] sm:$0xff]  ;;  %v748_v51 = vld [vmem:[%s875_s3] ss:$0 sm:$0xff] }
  0x14   :  { %466 = vmatmul.msk.f32.gmra.mxu0 %vm62_vm0, %v27_v16  ;;  %477 = vmatmul.msk.f32.gmra.mxu2 %vm62_vm0, %v38_v17 }
  0x15   :  { %488 = vmatmul.msk.f32.gmra.mxu3 %vm62_vm0, %v49_v18 }
  0x1a   :  { %497 = vmatmul.msk.f32.gmra.mxu1 %vm358_vm1, %v337_v19 }
  0x1c   :  { %467 = vmatmul.msk.f32.gmra.mxu0 %vm62_vm0, %v28_v20  ;;  %478 = vmatmul.msk.f32.gmra.mxu2 %vm62_vm0, %v39_v21 }
  0x1d   :  { %489 = vmatmul.msk.f32.gmra.mxu3 %vm62_vm0, %v50_v22 }
  0x22   :  { %498 = vmatmul.msk.f32.gmra.mxu1 %vm358_vm1, %v338_v23  ;;  %v782_v23 = vld [vmem:[%s877_s5] ss:$0 sm:$0xff] }
  0x24   :  { %468 = vmatmul.msk.f32.gmra.mxu0 %vm62_vm0, %v29_v24  ;;  %479 = vmatmul.msk.f32.gmra.mxu2 %vm62_vm0, %v40_v25 }
  0x25   :  { %490 = vmatmul.msk.f32.gmra.mxu3 %vm62_vm0, %v51_v26 }
  0x2a   :  { %499 = vmatmul.msk.f32.gmra.mxu1 %vm358_vm1, %v339_v27 }
  0x2c   :  { %469 = vmatmul.msk.f32.gmra.mxu0 %vm62_vm0, %v30_v28  ;;  %480 = vmatmul.msk.f32.gmra.mxu2 %vm62_vm0, %v41_v29 }
  0x2d   :  { %491 = vmatmul.msk.f32.gmra.mxu3 %vm62_vm0, %v52_v30 }
  0x32   :  { %500 = vmatmul.msk.f32.gmra.mxu1 %vm358_vm1, %v340_v31 }
  0x34   :  { %470 = vmatmul.msk.f32.gmra.mxu0 %vm62_vm0, %v31_v32  ;;  %481 = vmatmul.msk.f32.gmra.mxu2 %vm62_vm0, %v42_v33 }
  0x35   :  { %492 = vmatmul.msk.f32.gmra.mxu3 %vm62_vm0, %v53_v34 }
  0x3a   :  { %501 = vmatmul.msk.f32.gmra.mxu1 %vm358_vm1, %v341_v35 }
  0x3c   :  { %471 = vmatmul.msk.f32.gmra.mxu0 %vm62_vm0, %v32_v36  ;;  %482 = vmatmul.msk.f32.gmra.mxu2 %vm62_vm0, %v43_v37 }
  0x3d   :  { %493 = vmatmul.msk.f32.gmra.mxu3 %vm62_vm0, %v54_v38 }
  0x42   :  { %502 = vmatmul.msk.f32.gmra.mxu1 %vm358_vm1, %v342_v39 }
  0x44   :  { %472 = vmatmul.msk.f32.gmra.mxu0 %vm62_vm0, %v33_v40  ;;  %483 = vmatmul.msk.f32.gmra.mxu2 %vm62_vm0, %v44_v41 }
  0x45   :  { %494 = vmatmul.msk.f32.gmra.mxu3 %vm62_vm0, %v55_v42 }
  0x4a   :  { %503 = vmatmul.msk.f32.gmra.mxu1 %vm358_vm1, %v343_v43 }
  0x4c   :  { %473 = vmatmul.msk.f32.gmra.mxu0 %vm62_vm0, %v34_v44  ;;  %484 = vmatmul.msk.f32.gmra.mxu2 %vm62_vm0, %v45_v45 }
  0x4d   :  { %495 = vmatmul.msk.f32.gmra.mxu3 %vm62_vm0, %v56_v46 }
  0x52   :  { %504 = vmatmul.msk.f32.gmra.mxu1 %vm358_vm1, %v344_v47 }
  0x54   :  { %474 = vmatmul.msk.f32.gmra.mxu0 %vm62_vm0, %v35_v48  ;;  %485 = vmatmul.msk.f32.gmra.mxu2 %vm62_vm0, %v46_v49 }
  0x5a   :  { %505 = vmatmul.msk.f32.gmra.mxu1 %vm358_vm1, %v345_v50 }
  0x81   :  { %v176_v52 = vpop.f32.mrf.mxu0 }
  0x82   :  { %v177_v53 = vadd.f32 %v748_v51, %v176_v52 }
  0x84   :  { %v272_v8 = vmax.f32 %v177_v53, 0.0 }
  0x87   :  { %v209_v54 = vpop.f32.mrf.mxu2 }
  0x88   :  { %v242_v55 = vpop.f32.mrf.mxu3  ;;  %v210_v37 = vadd.f32 %v748_v51, %v209_v54 }
  0x89   :  { %v752_v56 = vadd.f32 %v748_v51, %v242_v55  ;;  %v179_v57 = vpop.f32.mrf.mxu0 }
  0x8a   :  { %v180_v58 = vadd.f32 %v748_v51, %v179_v57  ;;  %v283_v49 = vmax.f32 %v210_v37, 0.0 }
  0x8c   :  { %v273_v16 = vmax.f32 %v180_v58, 0.0 }
  0x8f   :  { %v212_v59 = vpop.f32.mrf.mxu2  ;;  %v406_v60 = vpop.f32.mrf.mxu1 }
  0x90   :  { %v755_v61 = vpop.f32.mrf.mxu3  ;;  %v407_v24 = vadd.f32 %v782_v23, %v406_v60  ;;  %v213_v45 = vadd.f32 %v748_v51, %v212_v59 }
  0x91   :  { %v757_v62 = vpop.f32.mrf.mxu0  ;;  %v246_v60 = vadd.f32 %v748_v51, %v755_v61 }
  0x92   :  { %v436_v30 = vmax.f32 %v407_v24, 0.0  ;;  %v284_v58 = vmax.f32 %v213_v45, 0.0 }
  0x97   :  { %v759_v63 = vpop.f32.mrf.mxu2  ;;  %v409_v0 = vpop.f32.mrf.mxu1 }
  0x98   :  { %v761_v1 = vpop.f32.mrf.mxu3  ;;  %v410_v36 = vadd.f32 %v782_v23, %v409_v0 }
  0x99   :  { %v185_v2 = vpop.f32.mrf.mxu0 }
  0x9a   :  { %v186_v33 = vadd.f32 %v748_v51, %v185_v2  ;;  %v437_v46 = vmax.f32 %v410_v36, 0.0 }
  0x9c   :  { %v275_v38 = vmax.f32 %v186_v33, 0.0  ;;  %v295_v33 = vmax.f32 %v246_v60, 0.0 }
  0x9f   :  { %v763_v3 = vpop.f32.mrf.mxu2  ;;  %v412_v4 = vpop.f32.mrf.mxu1 }
  0xa0   :  { %v765_v5 = vpop.f32.mrf.mxu3  ;;  %v413_v55 = vadd.f32 %v782_v23, %v412_v4  ;;  %v219_v36 = vadd.f32 %v748_v51, %v763_v3 }
  0xa1   :  { %v188_v6 = vpop.f32.mrf.mxu0 }
  0xa2   :  { %v189_v7 = vadd.f32 %v748_v51, %v188_v6 }
  0xa4   :  { %v276_v9 = vmax.f32 %v189_v7, 0.0 }
  0xa6   :  { %v304_v10 = vmax.f32 %v272_v8, %v276_v9 }
  0xa7   :  { %v221_v11 = vpop.f32.mrf.mxu2  ;;  %v768_v12 = vpop.f32.mrf.mxu1 }
  0xa8   :  { %v770_v13 = vpop.f32.mrf.mxu3  ;;  %v222_v50 = vadd.f32 %v748_v51, %v221_v11 }
  0xa9   :  { %v191_v14 = vpop.f32.mrf.mxu0 }
  0xaa   :  { %v192_v15 = vadd.f32 %v748_v51, %v191_v14  ;;  %v287_v0 = vmax.f32 %v222_v50, 0.0  ;;  %v183_v14 = vadd.f32 %v748_v51, %v757_v62  ;;  %v416_v62 = vadd.f32 %v782_v23, %v768_v12 }
  0xac   :  { %v277_v17 = vmax.f32 %v192_v15, 0.0  ;;  %v438_v15 = vmax.f32 %v413_v55, 0.0 }
  0xae   :  { %v773_v18 = vmax.f32 %v273_v16, %v277_v17 }
  0xaf   :  { %v224_v19 = vpop.f32.mrf.mxu2  ;;  %v775_v20 = vpop.f32.mrf.mxu1 }
  0xb0   :  { %v777_v21 = vpop.f32.mrf.mxu3  ;;  %v225_v52 = vadd.f32 %v748_v51, %v224_v19 }
  0xb1   :  { %v194_v22 = vpop.f32.mrf.mxu0 }
  0xb2   :  { %v288_v7 = vmax.f32 %v225_v52, 0.0 }
  0xb7   :  { %v227_v25 = vpop.f32.mrf.mxu2  ;;  %v421_v26 = vpop.f32.mrf.mxu1 }
  0xb8   :  { %v785_v27 = vpop.f32.mrf.mxu3  ;;  %v422_v28 = vadd.f32 %v782_v23, %v421_v26 }
  0xb9   :  { %v197_v29 = vpop.f32.mrf.mxu0 }
  0xba   :  { %v441_v31 = vmax.f32 %v422_v28, 0.0  ;;  %v198_v32 = vadd.f32 %v748_v51, %v197_v29  ;;  %v195_v28 = vadd.f32 %v748_v51, %v194_v22  ;;  %v228_v29 = vadd.f32 %v748_v51, %v227_v25 }
  0xbb   :  { %v249_v25 = vadd.f32 %v748_v51, %v761_v1 }
  0xbc   :  { %v446_v34 = vmax.f32 %v436_v30, %v441_v31  ;;  %v279_v35 = vmax.f32 %v198_v32, 0.0  ;;  %v278_v37 = vmax.f32 %v195_v28, 0.0 }
  0xbe   :  { %451 = vst [vmem:[%s878_s7] sm:$0xff] %v446_v34  ;;  %v307_v43 = vmax.f32 %v275_v38, %v279_v35  ;;  %v274_v34 = vmax.f32 %v183_v14, 0.0 }
  0xbf   :  { %v795_v39 = vpop.f32.mrf.mxu2  ;;  %v424_v40 = vpop.f32.mrf.mxu1 }
  0xc0   :  { %v797_v41 = vpop.f32.mrf.mxu3  ;;  %v425_v42 = vadd.f32 %v782_v23, %v424_v40  ;;  %v311_v57 = vmax.f32 %v307_v43, %v283_v49 }
  0xc1   :  { %v200_v44 = vpop.f32.mrf.mxu0 }
  0xc2   :  { %v442_v47 = vmax.f32 %v425_v42, 0.0  ;;  %v201_v48 = vadd.f32 %v748_v51, %v200_v44  ;;  %v315_v16 = vmax.f32 %v311_v57, %v287_v0  ;;  %v289_v42 = vmax.f32 %v228_v29, 0.0 }
  0xc4   :  { %v447_v53 = vmax.f32 %v437_v46, %v442_v47  ;;  %v280_v54 = vmax.f32 %v201_v48, 0.0  ;;  %v439_v46 = vmax.f32 %v416_v62, 0.0 }
  0xc6   :  { %452 = vst [vmem:[%s878_s7 + $0x8] sm:$0xff] %v447_v53  ;;  %v308_v59 = vmax.f32 %v304_v10, %v280_v54  ;;  %v216_v10 = vadd.f32 %v748_v51, %v759_v63  ;;  %v258_v63 = vadd.f32 %v748_v51, %v777_v21  ;;  %v296_v53 = vmax.f32 %v249_v25, 0.0 }
  0xc7   :  { %v233_v2 = vpop.f32.mrf.mxu2  ;;  %v427_v6 = vpop.f32.mrf.mxu1  ;;  %v231_v54 = vadd.f32 %v748_v51, %v795_v39  ;;  %v252_v39 = vadd.f32 %v748_v51, %v765_v5  ;;  %v264_v5 = vadd.f32 %v748_v51, %v797_v41 }
  0xc8   :  { %v312_v8 = vmax.f32 %v308_v59, %v284_v58  ;;  %v234_v9 = vadd.f32 %v748_v51, %v233_v2  ;;  %v811_v11 = vpop.f32.mrf.mxu3  ;;  %v428_v4 = vadd.f32 %v782_v23, %v427_v6  ;;  %v285_v35 = vmax.f32 %v216_v10, 0.0 }
  0xc9   :  { %v203_v61 = vpop.f32.mrf.mxu0  ;;  %v299_v47 = vmax.f32 %v258_v63, 0.0  ;;  %v306_v58 = vmax.f32 %v274_v34, %v278_v37  ;;  %v286_v6 = vmax.f32 %v219_v36, 0.0  ;;  %v290_v14 = vmax.f32 %v231_v54, 0.0 }
  0xca   :  { %v291_v17 = vmax.f32 %v234_v9, 0.0  ;;  %v443_v19 = vmax.f32 %v428_v4, 0.0  ;;  %v204_v24 = vadd.f32 %v748_v51, %v203_v61  ;;  %v316_v26 = vmax.f32 %v312_v8, %v288_v7 }
  0xcb   :  { %v255_v4 = vadd.f32 %v748_v51, %v770_v13  ;;  %v267_v13 = vadd.f32 %v748_v51, %v811_v11 }
  0xcc   :  { %v319_v30 = vmax.f32 %v315_v16, %v291_v17  ;;  %v448_v31 = vmax.f32 %v438_v15, %v443_v19  ;;  %v281_v32 = vmax.f32 %v204_v24, 0.0  ;;  %v294_v19 = vmax.f32 %v752_v56, 0.0 }
  0xcd   :  { %v301_v56 = vmax.f32 %v264_v5, 0.0  ;;  %v302_v62 = vmax.f32 %v267_v13, 0.0 }
  0xce   :  { %453 = vst [vmem:[%s878_s7 + $0x10] sm:$0xff] %v448_v31  ;;  %v309_v22 = vmax.f32 %v773_v18, %v281_v32  ;;  %v323_v38 = vmax.f32 %v319_v30, %v295_v33  ;;  %v261_v18 = vadd.f32 %v748_v51, %v785_v27  ;;  %v419_v27 = vadd.f32 %v782_v23, %v775_v20 }
  0xcf   :  { %v236_v12 = vpop.f32.mrf.mxu2  ;;  %v430_v40 = vpop.f32.mrf.mxu1  ;;  %v297_v30 = vmax.f32 %v252_v39, 0.0  ;;  %v298_v31 = vmax.f32 %v255_v4, 0.0 }
  0xd0   :  { %v313_v21 = vmax.f32 %v309_v22, %v285_v35  ;;  %v237_v43 = vadd.f32 %v748_v51, %v236_v12  ;;  %v269_v44 = vpop.f32.mrf.mxu3  ;;  %v431_v45 = vadd.f32 %v782_v23, %v430_v40  ;;  %v327_v57 = vmax.f32 %v323_v38, %v299_v47 }
  0xd1   :  { %v270_v1 = vadd.f32 %v748_v51, %v269_v44  ;;  %v206_v48 = vpop.f32.mrf.mxu0  ;;  %v300_v7 = vmax.f32 %v261_v18, 0.0  ;;  %v440_v24 = vmax.f32 %v419_v27, 0.0 }
  0xd2   :  { %v292_v3 = vmax.f32 %v237_v43, 0.0  ;;  %v444_v49 = vmax.f32 %v431_v45, 0.0  ;;  %v207_v50 = vadd.f32 %v748_v51, %v206_v48  ;;  %v317_v52 = vmax.f32 %v313_v21, %v289_v42 }
  0xd3   :  { %v303_v55 = vmax.f32 %v270_v1, 0.0 }
  0xd4   :  { %v320_v59 = vmax.f32 %v316_v26, %v292_v3  ;;  %v449_v60 = vmax.f32 %v439_v46, %v444_v49  ;;  %v282_v0 = vmax.f32 %v207_v50, 0.0 }
  0xd5   :  { %v331_v2 = vmax.f32 %v327_v57, %v303_v55 }
  0xd6   :  { %v324_v8 = vmax.f32 %v320_v59, %v296_v53  ;;  %454 = vst [vmem:[%s878_s7 + $0x18] sm:$0xff] %v449_v60  ;;  %v310_v9 = vmax.f32 %v306_v58, %v282_v0 }
  0xd7   :  { %335 = vst [vmem:[%s879_s6 + $0x18] sm:$0xff] %v331_v2  ;;  %v239_v20 = vpop.f32.mrf.mxu2  ;;  %v433_v10 = vpop.f32.mrf.mxu1 }
  0xd8   :  { %v328_v15 = vmax.f32 %v324_v8, %v300_v7  ;;  %v314_v16 = vmax.f32 %v310_v9, %v286_v6  ;;  %v240_v61 = vadd.f32 %v748_v51, %v239_v20  ;;  %v434_v17 = vadd.f32 %v782_v23, %v433_v10 }
  0xda   :  { %332 = vst [vmem:[%s879_s6] sm:$0xff] %v328_v15  ;;  %v318_v26 = vmax.f32 %v314_v16, %v290_v14  ;;  %v293_v28 = vmax.f32 %v240_v61, 0.0  ;;  %v445_v29 = vmax.f32 %v434_v17, 0.0 }
  0xdc   :  { %v322_v32 = vmax.f32 %v318_v26, %v294_v19  ;;  %v321_v23 = vmax.f32 %v317_v52, %v293_v28  ;;  %v450_v33 = vmax.f32 %v440_v24, %v445_v29 }
  0xde   :  { %v326_v63 = vmax.f32 %v322_v32, %v298_v31  ;;  %v325_v34 = vmax.f32 %v321_v23, %v297_v30  ;;  %455 = vst [vmem:[%s878_s7 + $0x20] sm:$0xff] %v450_v33 }
  0xe0   :  { %v330_v51 = vmax.f32 %v326_v63, %v302_v62  ;;  %v329_v41 = vmax.f32 %v325_v34, %v301_v56 }
  0xe2   :  { %334 = vst [vmem:[%s879_s6 + $0x10] sm:$0xff] %v330_v51 }
  0xe3   :  { %333 = vst [vmem:[%s879_s6 + $0x8] sm:$0xff] %v329_v41 }

</bundles_post_ra>
